<compile_context>
chip_gen: v5e
topology: v5e:2x2
jax: 0.10.0
libtpu: 0.0.40
codegen_flags: <defaults>
</compile_context>

<pallas_src>
import functools

import jax
import jax.numpy as jnp
from jax.experimental import pallas as pl
from jax.experimental.pallas import tpu as pltpu


def _cond_conv1d_kernel(x_ref, halo_ref, y_ref, w_ref, exps_ref, cosmask_ref,
                        o_ref, *, kernel_size, l_tile, compute_dtype):
    """One (batch sample, length tile) per grid step: fused conv1d + gamma."""
    b = pl.program_id(0)

    # ---- positional-encoding gamma (C_out, 1); constants hoisted to host -------
    y_val = y_ref[b]                                          # scalar f32 (SMEM)
    arg = 5000.0 * y_val * exps_ref[...]                      # (C_out, 1) f32
    gamma = jnp.where(cosmask_ref[...] > 0.5, jnp.cos(arg), jnp.sin(arg))

    # ---- fold gamma into the tiny augmented weight (C_out, K*C_in + 1) ---------
    # (bias already folded in as the last weight column -> epilogue is cast+store)
    w_scaled = (w_ref[...].astype(jnp.float32) * gamma).astype(compute_dtype)

    # ---- im2col patch matrix (K*C_in + 1, l_tile), rows ordered (k, ci) --------
    # x is already in compute dtype; the halo supplies the K-1 trailing columns.
    x_m = x_ref[0]                                            # (C_in, l_tile)
    x_h = halo_ref[0, 0]                                      # (C_in, halo_w)
    xw = jnp.concatenate([x_m, x_h], axis=-1)                 # (C_in, l_tile+halo)
    rows = [xw[:, k:k + l_tile] for k in range(kernel_size)]
    rows.append(jnp.ones((1, l_tile), dtype=compute_dtype))   # ones row -> bias
    h = jnp.concatenate(rows, axis=0)                         # (K*C_in+1, l_tile)

    # ---- conv (+bias, +gamma) as one MXU matmul, f32 accumulation --------------
    out = jnp.dot(w_scaled, h, preferred_element_type=jnp.float32)
    o_ref[0] = out.astype(o_ref.dtype)                        # (C_out, l_tile)


def _chip_tile_budget():
    """Per-chip (block VMEM budget, vmem_limit_bytes, max l_tile)."""
    try:
        cap = getattr(pltpu.get_tpu_info(), "vmem_capacity_bytes", None)
    except Exception:
        cap = None
    if cap is None:
        cap = 64 * 1024 * 1024                     # conservative (v7x-sized)
    if cap >= 100 * 1024 * 1024:                   # v5e / v6e: 128 MiB VMEM
        return 80 * 1024 * 1024, 96 * 1024 * 1024, 16384
    return 40 * 1024 * 1024, 48 * 1024 * 1024, 8192   # v7x: 64 MiB VMEM


def conditional_conv1d_forward(x, y, weight, bias, *, padding=0,
                               compute_dtype=jnp.bfloat16,
                               out_dtype=jnp.bfloat16,
                               l_tile=None):
    """x: (B, C_in, L), y: (B,) or (B,1), weight: (C_out, C_in, K), bias: (C_out,)."""
    B, c_in, L = x.shape
    c_out, c_in_w, K = weight.shape
    assert c_in_w == c_in
    assert c_out % 2 == 0, "PositionalEncoding requires an even out_channels"
    # TODO(synk): only stride=1, dilation=1, groups=1 Conv1d is implemented.

    if padding:
        x = jnp.pad(x, ((0, 0), (0, 0), (padding, padding)))
    l_pad = L + 2 * padding
    l_out = l_pad - K + 1
    assert l_out >= 1

    x_bytes = jnp.dtype(compute_dtype).itemsize
    out_bytes = jnp.dtype(out_dtype).itemsize

    # ---- chip-adaptive length tile & VMEM limit ---------------------------------
    budget, vmem_limit, max_tile = _chip_tile_budget()
    if l_tile is None:
        per_col = (2 * c_in * x_bytes               # x tile, double buffered
                   + 2 * c_out * out_bytes          # output tile, double buffered
                   + 2 * (K * c_in + 1) * x_bytes   # im2col patches (+ temps)
                   + 2 * c_out * 4)                 # f32 matmul result + epilogue
        l_tile = min(max_tile, max(128, (budget // per_col) // 128 * 128))
    if l_out <= l_tile:
        l_tile = l_out                              # single tile == full array dim
    n_tiles = -(-l_out // l_tile)
    main_len = n_tiles * l_tile
    halo_w = max(K - 1, 1)

    # ---- host-side prep (hoisted out of the kernel) ------------------------------
    # x pre-cast to the compute dtype (halves the x HBM DMA for bf16) and padded
    # so every tile's main + halo window is in-bounds.
    x_c = x.astype(compute_dtype)
    pad_right = main_len + halo_w - l_pad
    x_full = jnp.pad(x_c, ((0, 0), (0, 0), (0, pad_right))) if pad_right > 0 else x_c
    x_main = x_full[:, :, :main_len]                               # (B, C_in, main_len)
    t_idx = (jnp.arange(1, n_tiles + 1) * l_tile)[:, None] + jnp.arange(halo_w)[None, :]
    x_halo = jnp.transpose(x_full[:, :, t_idx], (0, 2, 1, 3))      # (B, n_tiles, C_in, halo_w)

    # weight flattened in (k, ci) row order to match the im2col, bias folded in as
    # an extra column, pre-cast to the MXU compute dtype.
    w_flat = jnp.transpose(weight, (0, 2, 1)).reshape(c_out, K * c_in)
    w_aug = jnp.concatenate([w_flat, bias.reshape(c_out, 1)], axis=1)
    w_aug = w_aug.astype(compute_dtype)                            # (C_out, K*C_in+1)

    half = c_out // 2
    j = jnp.arange(c_out, dtype=jnp.float32)
    exp_idx = jnp.where(j < half, j, j - half)
    exps = (0.0001 ** (exp_idx / float(half))).reshape(c_out, 1).astype(jnp.float32)
    cos_mask = (j >= half).astype(jnp.float32).reshape(c_out, 1)

    y1 = y.reshape(B).astype(jnp.float32)                          # 1-D SMEM scalars

    kernel = functools.partial(_cond_conv1d_kernel, kernel_size=K,
                               l_tile=l_tile, compute_dtype=compute_dtype)

    out_padded = pl.pallas_call(
        kernel,
        out_shape=jax.ShapeDtypeStruct((B, c_out, main_len), out_dtype),
        grid=(B, n_tiles),
        in_specs=[
            pl.BlockSpec((1, c_in, l_tile), lambda b, t: (b, 0, t)),      # x tile
            pl.BlockSpec((1, 1, c_in, halo_w), lambda b, t: (b, t, 0, 0)),  # halo
            pl.BlockSpec(memory_space=pltpu.MemorySpace.SMEM),            # y (B,)
            pl.BlockSpec((c_out, K * c_in + 1), lambda b, t: (0, 0)),     # weight+bias
            pl.BlockSpec((c_out, 1), lambda b, t: (0, 0)),                # exps (const)
            pl.BlockSpec((c_out, 1), lambda b, t: (0, 0)),                # cos mask
        ],
        out_specs=pl.BlockSpec((1, c_out, l_tile), lambda b, t: (b, 0, t)),
        compiler_params=pltpu.CompilerParams(
            dimension_semantics=("parallel", "parallel"),
            vmem_limit_bytes=int(vmem_limit)),
    )(x_main, x_halo, y1, w_aug, exps, cos_mask)

    # TODO(synk): for large-B / small-L workloads, pack G>1 samples per grid step
    # and consider pl.Buffered(3) on the x/out specs if profiling shows exposed DMA.
    if main_len == l_out:
        return out_padded
    return out_padded[:, :, :l_out]


def reference_forward(x, y, weight, bias, *, padding=0):
    """Pure-JAX reference matching the PyTorch module semantics."""
    out = jax.lax.conv_general_dilated(
        x, weight, window_strides=(1,), padding=[(padding, padding)],
        dimension_numbers=("NCH", "OIH", "NCH"))
    out = out + bias[None, :, None]

    B = x.shape[0]
    c_out = weight.shape[0]
    half = c_out // 2
    yv = y.reshape(B)
    exponents = jnp.arange(half, dtype=jnp.float32) / float(half)
    exponents = 0.0001 ** exponents
    arg = 5000.0 * yv[:, None] * exponents[None, :]
    gamma = jnp.concatenate([jnp.sin(arg), jnp.cos(arg)], axis=-1)     # (B, C_out)
    return out * gamma[:, :, None]


if __name__ == "__main__":
    B, C_in, L = 2, 4, 16
    C_out, K, padding = 32, 3, 1

    key = jax.random.PRNGKey(0)
    kx, ky, kw, kb = jax.random.split(key, 4)

    x = jax.random.normal(kx, (B, C_in, L), dtype=jnp.float32)
    y = jax.random.uniform(ky, (B, 1), dtype=jnp.float32)     # noise levels in [0, 1)

    # (the PyTorch module's orthogonal_ init only changes weight values, not the
    #  forward semantics; a deterministic uniform init is used here)
    bound = 1.0 / jnp.sqrt(jnp.float32(C_in * K))
    weight = jax.random.uniform(kw, (C_out, C_in, K),
                                minval=-bound, maxval=bound, dtype=jnp.float32)
    bias = jax.random.uniform(kb, (C_out,),
                              minval=-bound, maxval=bound, dtype=jnp.float32)

    ref = reference_forward(x, y, weight, bias, padding=padding)

    # 1) f32 compute / f32 output: tight check of the fused conv + gamma math.
    out_f32 = conditional_conv1d_forward(x, y, weight, bias, padding=padding,
                                         compute_dtype=jnp.float32,
                                         out_dtype=jnp.float32)
    out_f32 = jax.block_until_ready(out_f32)
    assert out_f32.shape == ref.shape
    assert jnp.allclose(out_f32, ref, atol=2e-3, rtol=2e-3), "f32 mismatch vs reference"

    # 2) production config: bf16 MXU operands + bf16 output (f32 accumulation).
    out_bf16 = conditional_conv1d_forward(x, y, weight, bias, padding=padding,
                                          compute_dtype=jnp.bfloat16,
                                          out_dtype=jnp.bfloat16)
    out_bf16 = jax.block_until_ready(out_bf16)
    assert jnp.allclose(out_bf16.astype(jnp.float32), ref,
                        atol=5e-2, rtol=5e-2), "bf16 mismatch vs reference"

    # 3) L-tiling / halo path: non-divisible l_out with a forced 128-lane tile.
    L2 = 300
    x2 = jax.random.normal(kx, (B, C_in, L2), dtype=jnp.float32)
    ref2 = reference_forward(x2, y, weight, bias, padding=padding)
    out2 = conditional_conv1d_forward(x2, y, weight, bias, padding=padding,
                                      compute_dtype=jnp.float32,
                                      out_dtype=jnp.float32, l_tile=128)
    out2 = jax.block_until_ready(out2)
    assert out2.shape == ref2.shape
    assert jnp.allclose(out2, ref2, atol=2e-3, rtol=2e-3), "tiled mismatch vs reference"

    print("KERNEL_OK")
</pallas_src>

<mosaic_0001>
module attributes {stable_mosaic.version = 11 : i64} {
  func.func @_cond_conv1d_kernel(%arg0: i32, %arg1: i32, %arg2: memref<1x4x16xf32, #tpu.memory_space<vmem>>, %arg3: memref<1x1x4x2xf32, #tpu.memory_space<vmem>>, %arg4: memref<2xf32, #tpu.memory_space<smem>>, %arg5: memref<32x13xf32, #tpu.memory_space<vmem>>, %arg6: memref<32x1xf32, #tpu.memory_space<vmem>>, %arg7: memref<32x1xf32, #tpu.memory_space<vmem>>, %arg8: memref<1x32x16xf32, #tpu.memory_space<vmem>>) attributes {dimension_semantics = [#tpu.dimension_semantics<parallel>, #tpu.dimension_semantics<parallel>], iteration_bounds = array<i64: 2, 1>, scalar_prefetch = 0 : i64, scratch_operands = 0 : i64, tpu.core_type = #tpu.core_type<tc>, window_params = [{transform_indices = @transform_0, window_bounds = array<i64: 1, 4, 16>}, {transform_indices = @transform_1, window_bounds = array<i64: 1, 1, 4, 2>}, {transform_indices = @transform_2, window_bounds = array<i64: 2>}, {pipeline_mode = #tpu.pipeline_mode<synchronous>, transform_indices = @transform_3, window_bounds = array<i64: 32, 13>}, {pipeline_mode = #tpu.pipeline_mode<synchronous>, transform_indices = @transform_4, window_bounds = array<i64: 32, 1>}, {pipeline_mode = #tpu.pipeline_mode<synchronous>, transform_indices = @transform_5, window_bounds = array<i64: 32, 1>}, {transform_indices = @transform_6, window_bounds = array<i64: 1, 32, 16>}]} {
    %0 = arith.index_cast %arg0 : i32 to index
    %1 = memref.load %arg4[%0] : memref<2xf32, #tpu.memory_space<smem>>
    %cst = arith.constant 5.000000e+03 : f32
    %2 = arith.mulf %cst, %1 : f32
    %c0 = arith.constant 0 : index
    %c0_0 = arith.constant 0 : index
    %3 = vector.load %arg6[%c0, %c0_0] : memref<32x1xf32, #tpu.memory_space<vmem>>, vector<32x1xf32>
    %4 = vector.broadcast %2 : f32 to vector<32x1xf32>
    %5 = arith.mulf %4, %3 : vector<32x1xf32>
    %c0_1 = arith.constant 0 : index
    %c0_2 = arith.constant 0 : index
    %6 = vector.load %arg7[%c0_1, %c0_2] : memref<32x1xf32, #tpu.memory_space<vmem>>, vector<32x1xf32>
    %cst_3 = arith.constant 5.000000e-01 : f32
    %7 = vector.broadcast %cst_3 : f32 to vector<32x1xf32>
    %8 = arith.cmpf ogt, %6, %7 : vector<32x1xf32>
    %9 = math.cos %5 : vector<32x1xf32>
    %10 = math.sin %5 : vector<32x1xf32>
    %11 = arith.select %8, %9, %10 : vector<32x1xi1>, vector<32x1xf32>
    %c0_4 = arith.constant 0 : index
    %c0_5 = arith.constant 0 : index
    %12 = vector.load %arg5[%c0_4, %c0_5] : memref<32x13xf32, #tpu.memory_space<vmem>>, vector<32x13xf32>
    %13 = vector.broadcast %11 : vector<32x1xf32> to vector<32x13xf32>
    %14 = arith.mulf %12, %13 : vector<32x13xf32>
    %c0_6 = arith.constant 0 : index
    %c0_7 = arith.constant 0 : index
    %c0_8 = arith.constant 0 : index
    %15 = vector.load %arg2[%c0_6, %c0_7, %c0_8] : memref<1x4x16xf32, #tpu.memory_space<vmem>>, vector<1x4x16xf32>
    %16 = vector.shape_cast %15 : vector<1x4x16xf32> to vector<4x16xf32>
    %c0_9 = arith.constant 0 : index
    %c0_10 = arith.constant 0 : index
    %c0_11 = arith.constant 0 : index
    %c0_12 = arith.constant 0 : index
    %17 = vector.load %arg3[%c0_9, %c0_10, %c0_11, %c0_12] : memref<1x1x4x2xf32, #tpu.memory_space<vmem>>, vector<1x1x4x2xf32>
    %18 = vector.shape_cast %17 : vector<1x1x4x2xf32> to vector<4x2xf32>
    %19 = tpu.concatenate %16, %18 in 1 : vector<4x16xf32>, vector<4x2xf32> -> vector<4x18xf32>
    %20 = vector.extract_strided_slice %19 {offsets = [0, 0], sizes = [4, 16], strides = [1, 1]} : vector<4x18xf32> to vector<4x16xf32>
    %21 = vector.extract_strided_slice %19 {offsets = [0, 1], sizes = [4, 16], strides = [1, 1]} : vector<4x18xf32> to vector<4x16xf32>
    %22 = vector.extract_strided_slice %19 {offsets = [0, 2], sizes = [4, 16], strides = [1, 1]} : vector<4x18xf32> to vector<4x16xf32>
    %cst_13 = arith.constant 1.000000e+00 : f32
    %23 = vector.broadcast %cst_13 : f32 to vector<1x16xf32>
    %24 = tpu.concatenate %20, %21, %22, %23 in 0 : vector<4x16xf32>, vector<4x16xf32>, vector<4x16xf32>, vector<1x16xf32> -> vector<13x16xf32>
    %cst_14 = arith.constant dense<0.000000e+00> : vector<32x16xf32>
    %25 = tpu.matmul %14, %24, %cst_14 {dimension_numbers = #tpu.dot_dimension_numbers<[1], [0], [0], [1], [0, 0, 1, 1], [], []>} : vector<32x13xf32>, vector<13x16xf32>, vector<32x16xf32> -> vector<32x16xf32>
    %c0_15 = arith.constant 0 : index
    %c0_16 = arith.constant 0 : index
    %c0_17 = arith.constant 0 : index
    %26 = vector.load %arg8[%c0_15, %c0_16, %c0_17] : memref<1x32x16xf32, #tpu.memory_space<vmem>>, vector<1x32x16xf32>
    %27 = vector.shape_cast %26 : vector<1x32x16xf32> to vector<32x16xf32>
    %28 = vector.shape_cast %25 : vector<32x16xf32> to vector<1x32x16xf32>
    tpu.vector_store %arg8[%c0_15, %c0_16, %c0_17], %28 {strides = array<i32>} : memref<1x32x16xf32, #tpu.memory_space<vmem>>, vector<1x32x16xf32>,
    return
  }
  func.func @transform_0(%arg0: i32, %arg1: i32) -> (i32, i32, i32) {
    %c0_i32 = arith.constant 0 : i32
    %c0_i32_0 = arith.constant 0 : i32
    return %arg0, %c0_i32, %arg1 : i32, i32, i32
  }
  func.func @transform_1(%arg0: i32, %arg1: i32) -> (i32, i32, i32, i32) {
    %c0_i32 = arith.constant 0 : i32
    %c0_i32_0 = arith.constant 0 : i32
    %c0_i32_1 = arith.constant 0 : i32
    return %arg0, %arg1, %c0_i32, %c0_i32_0 : i32, i32, i32, i32
  }
  func.func @transform_2(%arg0: i32, %arg1: i32) -> i32 {
    %c0_i32 = arith.constant 0 : i32
    %c0_i32_0 = arith.constant 0 : i32
    return %c0_i32 : i32
  }
  func.func @transform_3(%arg0: i32, %arg1: i32) -> (i32, i32) {
    %c0_i32 = arith.constant 0 : i32
    %c0_i32_0 = arith.constant 0 : i32
    %c0_i32_1 = arith.constant 0 : i32
    return %c0_i32, %c0_i32_0 : i32, i32
  }
  func.func @transform_4(%arg0: i32, %arg1: i32) -> (i32, i32) {
    %c0_i32 = arith.constant 0 : i32
    %c0_i32_0 = arith.constant 0 : i32
    %c0_i32_1 = arith.constant 0 : i32
    return %c0_i32, %c0_i32_0 : i32, i32
  }
  func.func @transform_5(%arg0: i32, %arg1: i32) -> (i32, i32) {
    %c0_i32 = arith.constant 0 : i32
    %c0_i32_0 = arith.constant 0 : i32
    %c0_i32_1 = arith.constant 0 : i32
    return %c0_i32, %c0_i32_0 : i32, i32
  }
  func.func @transform_6(%arg0: i32, %arg1: i32) -> (i32, i32, i32) {
    %c0_i32 = arith.constant 0 : i32
    %c0_i32_0 = arith.constant 0 : i32
    return %arg0, %c0_i32, %arg1 : i32, i32, i32
  }
}

</mosaic_0001>

<bundles_post_ra>
// kernel: tpu_custom_call.1
= control target key start
LH: loop header
LB: loop body
LE: loop exit
PB: predicated region body
PF: predicated region fallthrough
CT: control target
= control target key end

     0   :  { %11 = vsyncpa [#allocation3], 0  ;;  %s1972_s21 = smov 0   ;;  %s1974_s22 = smov 0   ;;  %s2496_s0 = inlined_call_operand.vmem [shape: f32[2,4,16], index: 0, kind: input, shape index: {}]   ;;  %s2497_s1 = inlined_call_operand.vmem [shape: f32[2,1,4,2], index: 1, kind: input, shape index: {}]   ;;  %s2498_s2 = inlined_call_operand.vmem [shape: f32[2], index: 2, kind: input, shape index: {}]   ;;  %s2499_s3 = inlined_call_operand.vmem [shape: f32[32,13], index: 3, kind: input, shape index: {}]   ;;  %s2500_s4 = inlined_call_operand.vmem [shape: f32[32,1], index: 4, kind: input, shape index: {}]   ;;  %s2501_s5 = inlined_call_operand.vmem [shape: f32[32,1], index: 5, kind: input, shape index: {}]   ;;  %s2502_s6 = inlined_call_operand.vmem [shape: f32[2,32,16], index: 6, kind: output, shape index: {}]  }
   0x1   :  { %s1976_s23 = smov 0  }
   0x2 LB: > { %s1786_s24 = sadd.s32 4294967295, %s1924_s23   ;;  %s29_s25 = sadd.s32 1, %s1920_s22  ;;  %s1924_s23 = sphi %s1976_s23, %s17_s23   ;;  %s1920_s22 = sphi %s1974_s22, %s2510_s22   ;;  %s1916_s21 = sphi %s1972_s21, %s2509_s21  }
   0x3   : > { %p31_p0 = scmp.ge.s32.totalorder %s29_s25, 2  ;;  %p1788_p1 = scmp.ge.s32.totalorder %s1924_s23, 1 }
   0x4   : > { %p202_p2 = scmp.lt.s32.totalorder %s1924_s23, 3  ;;  %p1843_p4 = scmp.eq.s32.totalorder %s1786_s24, 0 }
   0x5   : > { %s2512_s25 = smov (%p31_p0, %s29_s25), 0  ;;  %s214_s28 = sshll.u32 %s2498_s2, 4  ;;  %s215_s28 = int_to_ptr.vmem [resolvable:$true] %s214_s28 }
   0x6   : > { %p203_p3 = pnand %p1788_p1, %p202_p2  ;;  %s1926_s29 = smov [#allocation2]  }
   0x8   : > { %p1839_p5 = pneg %p203_p3  ;;  %256 = sbr.rel (%p203_p3) target bundleno = 448 (0x1c0), region = 44 }
   0xa   : > { %p1840_p6 = pnand %p1843_p4, %p1839_p5 }
   0xc   : > { %1842 = dma.vmem_to_smem (!%p1840_p6), %s215_s28, 16, %s1926_s29, [#allocation3]  }
   0xd   : > { %1911 = dma.done.wait (%p1843_p4), [#allocation3], 16  }
   0xe   : > { %1913 = vsyncadd (%p1843_p4), [#allocation3], 4294967280 }
   0xf   : > { %263 = sfence }
  0x10   : > { %p300_p7 = scmp.lt.s32.totalorder %s1916_s21, 1  ;;  %v1927_v0 = vmov 0   ;;  %s322_s30 = sld [smem:[#allocation2 + %s1916_s21]]  ;;  %v326_v2 = vld [vmem:[%s2500_s4 + $0x10] sm:$0xff]  ;;  %v327_v3 = vld [vmem:[%s2500_s4 + $0x18] sm:$0xff]  ;;  %v325_v11 = vld [vmem:[%s2500_s4 + $0x8] sm:$0xff] }
  0x11   : > { %1880 = vset.pattern.permute.xlu1 %v1927_v0  ;;  %1882 = vset.pattern.permute.xlu0 %v1927_v0  ;;  %s1928_s11 = smov 16   ;;  %v1929_v32 = vmov 683565275   ;;  %v1930_v34 = vmov 2475754826   ;;  %s1935_s8 = smov 126  }
  0x12   : > { %s2514_s21 = smov (!%p300_p7, %s1916_s21), 1  ;;  %1881 = vset.pattern.permute.xlu2 %v1927_v0  ;;  %v1931_v36 = vmov 2131351028   ;;  %v1932_v38 = vmov 2102212464   ;;  %s1936_s9 = smov 127  }
  0x13   : > { %s1793_s7 = sshll.u32 %s2514_s21, 2  ;;  %v1933_v40 = vmov 920167782   ;;  %v1934_v49 = vmov 1326507024   ;;  %s1828_s26 = sshll.u32 %s2514_s21, 5 }
  0x14   : > { %s313_s10 = scalar_lea.vmem %s2497_s1, %s1793_s7  ;;  %s306_s29 = scalar_lea.vmem %s2496_s0, %s1793_s7 }
  0x15   : > { %v1610_v1 = vld [vmem:[%s313_s10] sm:$0xf] }
  0x16   : > { %1612 = vrot.lane.b32.xlu0 %v1610_v1, %s1928_s11  ;;  %s323_s12 = smul.f32 5000.0, %s322_s30 }
  0x18   : > { %v2011_v4 = vstv %s323_s12 }
  0x19   : > { %v2014_v5 = vmul.f32 %v2011_v4, %v326_v2  ;;  %v2017_v6 = vmul.f32 %v2011_v4, %v327_v3  ;;  %v2029_v15 = vmul.f32 %v2011_v4, %v325_v11 }
  0x1b   : > { %v649_v7 = vand.u32 2147483647, %v2014_v5  ;;  %v652_v8 = vand.u32 2139095040, %v2014_v5  ;;  %v803_v9 = vand.u32 2147483647, %v2017_v6  ;;  %v806_v10 = vand.u32 2139095040, %v2017_v6 }
  0x1c   : > { %v498_v22 = vand.u32 2139095040, %v2029_v15 }
  0x1d   : > { %v653_v12 = vshrl.u32 %v652_v8, 23  ;;  %v656_v13 = vand.u32 8388607, %v649_v7  ;;  %v807_v14 = vshrl.u32 %v806_v10, 23  ;;  %v810_v19 = vand.u32 8388607, %v803_v9 }
  0x1e   : > { %v2040_v30 = vshrl.u32 %v498_v22, 23 }
  0x1f   : > { %v1803_v16 = vadd.s32 4294967169, %v653_v12  ;;  %v657_v17 = vor.u32 8388608, %v656_v13  ;;  %v1806_v18 = vadd.s32 4294967169, %v807_v14  ;;  %v811_v25 = vor.u32 8388608, %v810_v19 }
  0x21   : > { %v659_v20 = vadd.s32 1, %v1803_v16  ;;  %v813_v21 = vadd.s32 1, %v1806_v18  ;;  %v2034_v24 = vshll.u32 %v657_v17, 8  ;;  %v2048_v43 = vshll.u32 %v811_v25, 8 }
  0x23   : > { %vm660_vm0 = vcmp.gt.s32.totalorder %v659_v20, 0  ;;  %vm814_vm1 = vcmp.gt.s32.totalorder %v813_v21, 0  ;;  %v698_v42 = vand.u32 65535, %v2034_v24  ;;  %v699_v47 = vshrl.u32 %v2034_v24, 16 }
  0x24   : > { %v661_v23 = vsel %vm660_vm0, %v659_v20, 0  ;;  %v815_v27 = vsel %vm814_vm1, %v813_v21, 0 }
  0x25   : > { %v663_v26 = vand.u32 31, %v661_v23  ;;  %v2036_v28 = vshrl.u32 %v661_v23, 5  ;;  %v2038_v29 = vand.u32 31, %v815_v27  ;;  %v2068_v60 = vshrl.u32 %v815_v27, 5 }
  0x27   : > { %v664_v31 = vsub.s32 32, %v663_v26  ;;  %v666_v33 = vshll.u32 %v1929_v32, %v663_v26  ;;  %v669_v35 = vshll.u32 %v1930_v34, %v663_v26  ;;  %v672_v37 = vshll.u32 %v1931_v36, %v663_v26 }
  0x28   : > { %v675_v39 = vshll.u32 %v1932_v38, %v663_v26  ;;  %v678_v41 = vshll.u32 %v1933_v40, %v663_v26  ;;  %vm681_vm2 = vcmp.lt.s32.totalorder %v2036_v28, 1  ;;  %vm684_vm3 = vcmp.lt.s32.totalorder %v2036_v28, 4 }
  0x29   : > { %v667_v44 = vshrl.u32 %v1930_v34, %v664_v31  ;;  %v670_v45 = vshrl.u32 %v1931_v36, %v664_v31  ;;  %v673_v46 = vshrl.u32 %v1932_v38, %v664_v31  ;;  %v676_v48 = vshrl.u32 %v1933_v40, %v664_v31 }
  0x2a   : > { %v679_v50 = vshrl.u32 %v1934_v49, %v664_v31  ;;  %v2059_v54 = vsub.s32 32, %v2038_v29  ;;  %v665_v55 = vshrl.u32 %v1929_v32, %v664_v31  ;;  %vm683_vm4 = vcmp.lt.s32.totalorder %v2036_v28, 3 }
  0x2b   : > { %v668_v51 = vor.u32 %v667_v44, %v666_v33  ;;  %v671_v52 = vor.u32 %v670_v45, %v669_v35  ;;  %v674_v53 = vor.u32 %v673_v46, %v672_v37  ;;  %v677_v56 = vor.u32 %v676_v48, %v675_v39 }
  0x2c   : > { %v680_v57 = vor.u32 %v679_v50, %v678_v41  ;;  %vm682_vm5 = vcmp.lt.s32.totalorder %v2036_v28, 2  ;;  %v820_v63 = vshll.u32 %v1929_v32, %v2038_v29  ;;  %v823_v1 = vshll.u32 %v1930_v34, %v2038_v29 }
  0x2d   : > { %v689_v58 = vsel %vm681_vm2, %v668_v51, %v671_v52  ;;  %v693_v59 = vsel %vm681_vm2, %v671_v52, %v674_v53  ;;  %v690_v61 = vsel %vm684_vm3, %v677_v56, 920167782  ;;  %v686_v2 = vsel %vm684_vm3, %v674_v53, 2102212464 }
  0x2e   : > { %v694_v62 = vsel %vm684_vm3, %v680_v57, 1326507024  ;;  %v691_v3 = vsel %vm683_vm4, %v674_v53, %v690_v61  ;;  %v821_v10 = vshrl.u32 %v1930_v34, %v2059_v54  ;;  %v685_v11 = vsel %vm681_vm2, %v665_v55, %v668_v51 }
  0x2f   : > { %v695_v8 = vsel %vm683_vm4, %v677_v56, %v694_v62  ;;  %v692_v12 = vsel %vm682_vm5, %v689_v58, %v691_v3  ;;  %v824_v14 = vshrl.u32 %v1931_v36, %v2059_v54  ;;  %v687_v20 = vsel %vm683_vm4, %v671_v52, %v686_v2 }
  0x30   : > { %v696_v13 = vsel %vm682_vm5, %v693_v59, %v695_v8  ;;  %v722_v18 = vand.u32 65535, %v692_v12  ;;  %v723_v19 = vshrl.u32 %v692_v12, 16  ;;  %v2096_v21 = vor.u32 %v821_v10, %v820_v63 }
  0x31   : > { %v700_v16 = vand.u32 65535, %v696_v13  ;;  %v701_v17 = vshrl.u32 %v696_v13, 16  ;;  %v2098_v22 = vor.u32 %v824_v14, %v823_v1  ;;  %v826_v23 = vshll.u32 %v1931_v36, %v2038_v29 }
  0x32   : > { %v827_v31 = vshrl.u32 %v1932_v38, %v2059_v54  ;;  %v724_v35 = vmul.u32 %v722_v18, %v698_v42  ;;  %v725_v37 = vmul.u32 %v723_v19, %v698_v42  ;;  %v726_v39 = vmul.u32 %v722_v18, %v699_v47 }
  0x33   : > { %v702_v25 = vmul.u32 %v700_v16, %v698_v42  ;;  %v703_v26 = vmul.u32 %v701_v17, %v698_v42  ;;  %v704_v27 = vmul.u32 %v700_v16, %v699_v47  ;;  %v705_v33 = vmul.u32 %v701_v17, %v699_v47 }
  0x34   : > { %v727_v46 = vmul.u32 %v723_v19, %v699_v47  ;;  %v728_v50 = vshll.u32 %v725_v37, 16  ;;  %v729_v51 = vshrl.u32 %v725_v37, 16  ;;  %v730_v52 = vshll.u32 %v726_v39, 16 }
  0x35   : > { %v706_v41 = vshll.u32 %v703_v26, 16  ;;  %v707_v44 = vshrl.u32 %v703_v26, 16  ;;  %v708_v45 = vshll.u32 %v704_v27, 16  ;;  %v709_v48 = vshrl.u32 %v704_v27, 16 }
  0x36   : > { %v731_v55 = vshrl.u32 %v726_v39, 16  ;;  %v829_v56 = vshll.u32 %v1932_v38, %v2038_v29  ;;  %vm732_vm7 = vc.u32 %v724_v35, %v728_v50  ;;  %v734_v58 = vadd.s32 %v728_v50, %v724_v35 }
  0x37   : > { %vm710_vm6 = vc.u32 %v702_v25, %v706_v41  ;;  %v712_v53 = vadd.s32 %v706_v41, %v702_v25  ;;  %v830_v42 = vshrl.u32 %v1933_v40, %v2059_v54  ;;  %v733_v47 = vsel %vm732_vm7, 1, %v1927_v0 }
  0x38   : > { %v711_v57 = vsel %vm710_vm6, 1, %v1927_v0  ;;  %v832_v61 = vshll.u32 %v1933_v40, %v2038_v29  ;;  %v735_v63 = vadd.s32 %v733_v47, %v727_v46  ;;  %vm736_vm9 = vc.u32 %v734_v58, %v730_v52 }
  0x39   : > { %v713_v59 = vadd.s32 %v711_v57, %v705_v33  ;;  %vm714_vm8 = vc.u32 %v712_v53, %v708_v45  ;;  %v828_v1 = vor.u32 %v827_v31, %v826_v23  ;;  %v737_v3 = vsel %vm736_vm9, 1, %v1927_v0 }
  0x3a   : > { %v715_v62 = vsel %vm714_vm8, 1, %v1927_v0  ;;  %v831_v8 = vor.u32 %v830_v42, %v829_v56  ;;  %v833_v10 = vshrl.u32 %v1934_v49, %v2059_v54  ;;  %v2116_v12 = vadd.s32 %v734_v58, %v730_v52 }
  0x3b   : > { %v717_v2 = vadd.s32 %v715_v62, %v713_v59  ;;  %v739_v13 = vadd.s32 %v737_v3, %v735_v63  ;;  %vm835_vm10 = vcmp.lt.s32.totalorder %v2068_v60, 1  ;;  %vm837_vm11 = vcmp.lt.s32.totalorder %v2068_v60, 3 }
  0x3c   : > { %v834_v14 = vor.u32 %v833_v10, %v832_v61  ;;  %vm836_vm12 = vcmp.lt.s32.totalorder %v2068_v60, 2  ;;  %vm838_vm13 = vcmp.lt.s32.totalorder %v2068_v60, 4  ;;  %v688_v16 = vsel %vm682_vm5, %v685_v11, %v687_v20 }
  0x3d   : > { %v718_v29 = vadd.s32 %v717_v2, %v707_v44  ;;  %v740_v17 = vadd.s32 %v739_v13, %v729_v51  ;;  %v843_v18 = vsel %vm835_vm10, %v2096_v21, %v2098_v22  ;;  %v844_v19 = vsel %vm838_vm13, %v831_v8, 920167782 }
  0x3e   : > { %v845_v25 = vsel %vm837_vm11, %v828_v1, %v844_v19  ;;  %v847_v26 = vsel %vm835_vm10, %v2098_v22, %v828_v1  ;;  %v853_v28 = vshrl.u32 %v2048_v43, 16  ;;  %v848_v27 = vsel %vm838_vm13, %v834_v14, 1326507024 }
  0x3f   : > { %v2130_v23 = vadd.s32 %v718_v29, %v709_v48  ;;  %v741_v11 = vadd.s32 %v740_v17, %v731_v55  ;;  %v846_v20 = vsel %vm836_vm12, %v843_v18, %v845_v25  ;;  %v852_v31 = vand.u32 65535, %v2048_v43 }
  0x40   : > { %v742_v33 = vmul.u32 %v2034_v24, %v688_v16  ;;  %v849_v35 = vsel %vm837_vm11, %v831_v8, %v848_v27  ;;  %v876_v37 = vand.u32 65535, %v846_v20  ;;  %v877_v44 = vshrl.u32 %v846_v20, 16 }
  0x41   : > { %vm744_vm14 = vc.u32 %v2130_v23, %v2116_v12  ;;  %v745_v39 = vadd.s32 1, %v741_v11  ;;  %v850_v41 = vsel %vm836_vm12, %v847_v26, %v849_v35  ;;  %v1800_v24 = vadd.s32 4294967169, %v2040_v30 }
  0x42   : > { %v854_v45 = vand.u32 65535, %v850_v41  ;;  %v855_v46 = vshrl.u32 %v850_v41, 16  ;;  %v880_v48 = vmul.u32 %v876_v37, %v853_v28  ;;  %v878_v51 = vmul.u32 %v876_v37, %v852_v31 }
  0x43   : > { %v746_v50 = vsel %vm744_vm14, %v745_v39, %v741_v11  ;;  %v879_v52 = vmul.u32 %v877_v44, %v852_v31  ;;  %v819_v58 = vshrl.u32 %v1929_v32, %v2059_v54  ;;  %v881_v42 = vmul.u32 %v877_v44, %v853_v28 }
  0x44   : > { %v747_v53 = vadd.s32 %v746_v50, %v742_v33  ;;  %v856_v55 = vmul.u32 %v854_v45, %v852_v31  ;;  %v857_v56 = vmul.u32 %v855_v46, %v852_v31  ;;  %v858_v57 = vmul.u32 %v854_v45, %v853_v28 }
  0x45   : > { %v882_v59 = vshll.u32 %v879_v52, 16  ;;  %v884_v47 = vshll.u32 %v880_v48, 16  ;;  %v859_v62 = vmul.u32 %v855_v46, %v853_v28  ;;  %v840_v3 = vsel %vm838_vm13, %v828_v1, 2102212464 }
  0x46   : > { %v748_v61 = vadd.s32 536870912, %v747_v53  ;;  %v860_v63 = vshll.u32 %v857_v56, 16  ;;  %v862_v2 = vshll.u32 %v858_v57, 16  ;;  %v505_v30 = vadd.s32 1, %v1800_v24 }
  0x47   : > { %vm886_vm15 = vc.u32 %v878_v51, %v882_v59  ;;  %v888_v8 = vadd.s32 %v882_v59, %v878_v51  ;;  %v839_v54 = vsel %vm835_vm10, %v819_v58, %v2096_v21  ;;  %v861_v18 = vshrl.u32 %v857_v56, 16 }
  0x48   : > { %v749_v10 = vshrl.u32 %v748_v61, 30  ;;  %vm864_vm0 = vc.u32 %v856_v55, %v860_v63  ;;  %v866_v13 = vadd.s32 %v860_v63, %v856_v55  ;;  %v887_v29 = vsel %vm886_vm15, 1, %v1927_v0 }
  0x49   : > { %v865_v14 = vsel %vm864_vm0, 1, %v1927_v0  ;;  %v889_v16 = vadd.s32 %v887_v29, %v881_v42  ;;  %vm890_vm1 = vc.u32 %v888_v8, %v884_v47  ;;  %v841_v1 = vsel %vm837_vm11, %v2098_v22, %v840_v3 }
  0x4a   : > { %v750_v17 = vshll.u32 %v749_v10, 30  ;;  %v867_v19 = vadd.s32 %v865_v14, %v859_v62  ;;  %vm868_vm2 = vc.u32 %v866_v13, %v862_v2  ;;  %v883_v26 = vshrl.u32 %v879_v52, 16 }
  0x4b   : > { %v869_v25 = vsel %vm868_vm2, 1, %v1927_v0  ;;  %v891_v28 = vsel %vm890_vm1, 1, %v1927_v0  ;;  %v863_v20 = vshrl.u32 %v858_v57, 16  ;;  %vm506_vm3 = vcmp.gt.s32.totalorder %v505_v30, 0 }
  0x4c   : > { %v751_v11 = vsub.s32 %v747_v53, %v750_v17  ;;  %v871_v21 = vadd.s32 %v869_v25, %v867_v19  ;;  %v885_v27 = vshrl.u32 %v880_v48, 16  ;;  %v893_v31 = vadd.s32 %v891_v28, %v889_v16 }
  0x4d   : > { %v2165_v37 = vadd.s32 %v888_v8, %v884_v47  ;;  %v842_v39 = vsel %vm836_vm12, %v839_v54, %v841_v1  ;;  %v507_v41 = vsel %vm506_vm3, %v505_v30, 0  ;;  %v773_v53 = vsub.s32 4, %v749_v10 }
  0x4e   : > { %vm752_vm4 = vcmp.lt.s32.totalorder %v751_v11, 0  ;;  %v753_v33 = vsub.s32 0, %v751_v11  ;;  %v872_v35 = vadd.s32 %v871_v21, %v861_v18  ;;  %v894_v22 = vadd.s32 %v893_v31, %v883_v26 }
  0x4f   : > { %v896_v51 = vmul.u32 %v2048_v43, %v842_v39  ;;  %v509_v48 = vand.u32 31, %v507_v41  ;;  %v495_v55 = vand.u32 2147483647, %v2029_v15  ;;  %v743_v60 = vadd.s32 %v2116_v12, %v2130_v23 }
  0x50   : > { %v754_v44 = vsel %vm752_vm4, %v753_v33, %v751_v11  ;;  %v2169_v45 = vadd.s32 %v872_v35, %v863_v20  ;;  %v895_v50 = vadd.s32 %v894_v22, %v885_v27  ;;  %vm651_vm7 = vcmp.lt.s32.totalorder %v2014_v5, 0 }
  0x51   : > { %v755_v46 = vclz %v754_v44  ;;  %v510_v42 = vsub.s32 32, %v509_v48  ;;  %vm2180_vm8 = vcmp.le.f32.partialorder %v649_v7, 0.7853982  ;;  %v774_v62 = vsel %vm651_vm7, %v773_v53, %v749_v10 }
  0x52   : > { %vm898_vm5 = vc.u32 %v2169_v45, %v2165_v37  ;;  %v899_v24 = vadd.s32 1, %v895_v50  ;;  %v502_v12 = vand.u32 8388607, %v495_v55  ;;  %v2188_v23 = vshrl.u32 %v507_v41, 5 }
  0x53   : > { %v1804_v52 = vadd.s32 4294967294, %v755_v46  ;;  %v515_v8 = vshll.u32 %v1930_v34, %v509_v48  ;;  %v516_v30 = vshrl.u32 %v1931_v36, %v510_v42  ;;  %v518_v7 = vshll.u32 %v1931_v36, %v509_v48 }
  0x54   : > { %v900_v56 = vsel %vm898_vm5, %v899_v24, %v895_v50  ;;  %v519_v13 = vshrl.u32 %v1932_v38, %v510_v42  ;;  %v524_v29 = vshll.u32 %v1933_v40, %v509_v48  ;;  %v525_v16 = vshrl.u32 %v1934_v49, %v510_v42 }
  0x55   : > { %vm1805_vm6 = vcmp.lt.s32.totalorder %v1804_v52, 0  ;;  %v901_v58 = vadd.s32 %v900_v56, %v896_v51  ;;  %v776_v17 = vsel %vm2180_vm8, 0, %v774_v62  ;;  %v503_v18 = vor.u32 8388608, %v502_v12 }
  0x56   : > { %v758_v57 = vsel %vm1805_vm6, 0, %v1804_v52  ;;  %v521_v19 = vshll.u32 %v1932_v38, %v509_v48  ;;  %v522_v1 = vshrl.u32 %v1933_v40, %v510_v42  ;;  %v513_v20 = vshrl.u32 %v1930_v34, %v510_v42 }
  0x57   : > { %v759_v43 = vsub.s32 32, %v758_v57  ;;  %v760_v59 = vshll.u32 %v751_v11, %v758_v57  ;;  %v763_v47 = vsub.s32 4294967266, %v758_v57  ;;  %v902_v3 = vadd.s32 536870912, %v901_v58 }
  0x58   : > { %v512_v11 = vshll.u32 %v1929_v32, %v509_v48  ;;  %v2205_v21 = vor.u32 %v516_v30, %v515_v8  ;;  %v520_v27 = vor.u32 %v519_v13, %v518_v7  ;;  %v526_v31 = vor.u32 %v525_v16, %v524_v29 }
  0x59   : > { %v761_v63 = vshrl.u32 %v743_v60, %v759_v43  ;;  %v764_v2 = vadd.s32 127, %v763_v47  ;;  %v2195_v14 = vshrl.u32 %v902_v3, 30  ;;  %vm527_vm9 = vcmp.lt.s32.totalorder %v2188_v23, 1 }
  0x5a   : > { %vm530_vm10 = vcmp.lt.s32.totalorder %v2188_v23, 4  ;;  %v523_v39 = vor.u32 %v522_v1, %v521_v19  ;;  %vm529_vm11 = vcmp.lt.s32.totalorder %v2188_v23, 3  ;;  %vm528_vm13 = vcmp.lt.s32.totalorder %v2188_v23, 2 }
  0x5b   : > { %v762_v54 = vor.u32 %v761_v63, %v760_v59  ;;  %v765_v10 = vshll.u32 %v764_v2, 23  ;;  %v904_v28 = vshll.u32 %v2195_v14, 30  ;;  %v1411_v44 = vadd.s32 3, %v776_v17 }
  0x5c   : > { %v539_v46 = vsel %vm527_vm9, %v2205_v21, %v520_v27  ;;  %v540_v50 = vsel %vm530_vm10, %v526_v31, 1326507024  ;;  %v2220_v51 = vshll.u32 %v503_v18, 8  ;;  %v514_v24 = vor.u32 %v513_v20, %v512_v11 }
  0x5d   : > { %v766_v25 = vor.u32 4788187, %v765_v10  ;;  %v769_v26 = vcvt.s32.f32 %v762_v54  ;;  %v2207_v35 = vsub.s32 %v901_v58, %v904_v28  ;;  %v541_v53 = vsel %vm529_vm11, %v523_v39, %v540_v50 }
  0x5e   : > { %vm805_vm14 = vcmp.lt.s32.totalorder %v2017_v6, 0  ;;  %v542_v56 = vsel %vm528_vm13, %v539_v46, %v541_v53  ;;  %v897_v58 = vadd.s32 %v2165_v37, %v2169_v45  ;;  %v511_v43 = vshrl.u32 %v1929_v32, %v510_v42 }
  0x5f   : > { %v767_v33 = vand.u32 2147483647, %v766_v25  ;;  %vm906_vm12 = vcmp.lt.s32.totalorder %v2207_v35, 0  ;;  %v907_v41 = vsub.s32 0, %v2207_v35  ;;  %v536_v59 = vsel %vm530_vm10, %v523_v39, 920167782 }
  0x60   : > { %v2241_v12 = vand.u32 65535, %v2220_v51  ;;  %v547_v63 = vshrl.u32 %v542_v56, 16  ;;  %v2245_v3 = vand.u32 3, %v776_v17  ;;  %v2247_v37 = vand.u32 3, %v1411_v44 }
  0x61   : > { %v770_v22 = vmul.f32 %v769_v26, %v767_v33  ;;  %v908_v52 = vsel %vm906_vm12, %v907_v41, %v2207_v35  ;;  %v535_v45 = vsel %vm527_vm9, %v514_v24, %v2205_v21  ;;  %vm2254_vm15 = vcmp.le.f32.partialorder %v803_v9, 0.7853982 }
  0x62   : > { %v909_v60 = vclz %v908_v52  ;;  %v537_v61 = vsel %vm529_vm11, %v520_v27, %v536_v59  ;;  %v2261_v8 = vshrl.u32 %v2220_v51, 16  ;;  %v546_v30 = vand.u32 65535, %v542_v56 }
  0x63   : > { %v771_v48 = vxor.u32 2147483648, %v770_v22  ;;  %v927_v54 = vsub.s32 4, %v2195_v14  ;;  %v2266_v17 = vmul.u32 %v547_v63, %v2241_v12  ;;  %v2270_v1 = vsel %vm527_vm9, %v511_v43, %v514_v24 }
  0x64   : > { %v1807_v62 = vadd.s32 4294967294, %v909_v60  ;;  %v538_v25 = vsel %vm528_vm13, %v535_v45, %v537_v61  ;;  %vm798_vm1 = vcmp.eq.s32.totalorder %v2245_v3, 2  ;;  %vm1417_vm2 = vcmp.eq.s32.totalorder %v2247_v37, 2 }
  0x65   : > { %v772_v57 = vsel %vm651_vm7, %v771_v48, %v770_v22  ;;  %v548_v11 = vmul.u32 %v546_v30, %v2241_v12  ;;  %v2278_v20 = vmul.u32 %v546_v30, %v2261_v8  ;;  %v532_v39 = vsel %vm530_vm10, %v520_v27, 2102212464  ;;  %v2288_v22 = vld [vmem:[%s2501_s5 + $0x10] sm:$0xff] }
  0x66   : > { %v2238_v47 = vsel %vm2180_vm8, %v2014_v5, %v772_v57  ;;  %vm1808_vm0 = vcmp.lt.s32.totalorder %v1807_v62, 0  ;;  %vm795_vm3 = vcmp.eq.s32.totalorder %v2245_v3, 0  ;;  %vm1414_vm4 = vcmp.eq.s32.totalorder %v2247_v37, 0 }
  0x67   : > { %v777_v2 = vmul.f32 %v2238_v47, %v2238_v47  ;;  %v912_v29 = vsel %vm1808_vm0, 0, %v1807_v62  ;;  %v551_v46 = vmul.u32 %v547_v63, %v2261_v8  ;;  %v552_v50 = vshll.u32 %v2266_v17, 16 }
  0x68   : > { %v913_v10 = vsub.s32 32, %v912_v29  ;;  %v914_v16 = vshll.u32 %v2207_v35, %v912_v29  ;;  %v917_v9 = vsub.s32 4294967266, %v912_v29  ;;  %v928_v35 = vsel %vm805_vm14, %v927_v54, %v2195_v14 }
  0x69   : > { %v778_v7 = vmul.f32 -0.001358992, %v777_v2  ;;  %v785_v13 = vmul.f32 -0.00019511016, %v777_v2  ;;  %vm794_vm5 = vcmp.lt.s32.totalorder %v2245_v3, 2  ;;  %vm1413_vm6 = vcmp.lt.s32.totalorder %v2247_v37, 2 }
  0x6a   : > { %v915_v26 = vshrl.u32 %v897_v58, %v913_v10  ;;  %v918_v28 = vadd.s32 127, %v917_v9  ;;  %v568_v27 = vand.u32 65535, %v538_v25  ;;  %v569_v52 = vshrl.u32 %v538_v25, 16 }
  0x6b   : > { %v779_v18 = vadd.f32 0.041655596, %v778_v7  ;;  %v786_v19 = vadd.f32 0.008332121, %v785_v13  ;;  %vm792_vm7 = vweird.f32 %v2014_v5  ;;  %v554_v60 = vshll.u32 %v2278_v20, 16 }
  0x6c   : > { %v916_v41 = vor.u32 %v915_v26, %v914_v16  ;;  %v919_v44 = vshll.u32 %v918_v28, 23  ;;  %vm556_vm8 = vc.u32 %v548_v11, %v552_v50  ;;  %vm339_vm9 = vcmp.gt.f32.partialorder %v2288_v22, 0.5 }
  0x6d   : > { %v780_v31 = vmul.f32 %v779_v18, %v777_v2  ;;  %v787_v33 = vmul.f32 %v786_v19, %v777_v2  ;;  %v930_v58 = vsel %vm2254_vm15, 0, %v928_v35  ;;  %v557_v43 = vsel %vm556_vm8, 1, %v1927_v0 }
  0x6e   : > { %v920_v24 = vor.u32 4788187, %v919_v44  ;;  %v923_v53 = vcvt.s32.f32 %v916_v41  ;;  %v533_v62 = vsel %vm529_vm11, %v2205_v21, %v532_v39  ;;  %v558_v63 = vadd.s32 %v552_v50, %v548_v11 }
  0x6f   : > { %v781_v48 = vadd.f32 -0.4999988, %v780_v31  ;;  %v788_v14 = vadd.f32 -0.16666654, %v787_v33  ;;  %v559_v45 = vadd.s32 %v557_v43, %v551_v46  ;;  %v571_v7 = vmul.u32 %v569_v52, %v2241_v12 }
  0x70   : > { %v921_v59 = vand.u32 2147483647, %v920_v24  ;;  %v572_v13 = vmul.u32 %v568_v27, %v2261_v8  ;;  %vm560_vm10 = vc.u32 %v558_v63, %v554_v60  ;;  %v570_v54 = vmul.u32 %v568_v27, %v2241_v12 }
  0x71   : > { %v782_v56 = vmul.f32 %v781_v48, %v777_v2  ;;  %v789_v57 = vmul.f32 %v788_v14, %v777_v2  ;;  %v553_v2 = vshrl.u32 %v2266_v17, 16  ;;  %v561_v9 = vsel %vm560_vm10, 1, %v1927_v0  ;;  %v324_v48 = vld [vmem:[%s2500_s4] sm:$0xff] }
  0x72   : > { %v924_v29 = vmul.f32 %v923_v53, %v921_v59  ;;  %v574_v21 = vshll.u32 %v571_v7, 16  ;;  %v555_v19 = vshrl.u32 %v2278_v20, 16  ;;  %v563_v25 = vadd.s32 %v561_v9, %v559_v45 }
  0x73   : > { %v783_v61 = vadd.f32 1.0, %v782_v56  ;;  %v790_v30 = vadd.f32 1.0, %v789_v57  ;;  %v573_v26 = vmul.u32 %v569_v52, %v2261_v8  ;;  %v576_v12 = vshll.u32 %v572_v13, 16 }
  0x74   : > { %v925_v18 = vxor.u32 2147483648, %v924_v29  ;;  %v575_v31 = vshrl.u32 %v571_v7, 16  ;;  %vm578_vm11 = vc.u32 %v570_v54, %v574_v21  ;;  %v580_v33 = vadd.s32 %v574_v21, %v570_v54 }
  0x75   : > { %v791_v10 = vmul.f32 %v790_v30, %v2238_v47  ;;  %v799_v16 = vxor.u32 2147483648, %v783_v61  ;;  %v579_v39 = vsel %vm578_vm11, 1, %v1927_v0  ;;  %v564_v50 = vadd.s32 %v563_v25, %v553_v2 }
  0x76   : > { %v926_v47 = vsel %vm805_vm14, %v925_v18, %v924_v29  ;;  %v581_v27 = vadd.s32 %v579_v39, %v573_v26  ;;  %vm582_vm12 = vc.u32 %v580_v33, %v576_v12  ;;  %v534_v53 = vsel %vm528_vm13, %v2270_v1, %v533_v62 }
  0x77   : > { %v796_v28 = vxor.u32 2147483648, %v791_v10  ;;  %v800_v11 = vsel %vm798_vm1, %v799_v16, %v791_v10  ;;  %v1419_v17 = vsel %vm1417_vm2, %v799_v16, %v791_v10  ;;  %v929_v35 = vsel %vm2254_vm15, %v2017_v6, %v926_v47  ;;  %v336_v47 = vld [vmem:[%s2501_s5 + $0x18] sm:$0xff] }
  0x78   : > { %v931_v46 = vmul.f32 %v929_v35, %v929_v35  ;;  %v583_v24 = vsel %vm582_vm12, 1, %v1927_v0  ;;  %v577_v60 = vshrl.u32 %v572_v13, 16  ;;  %v2345_v5 = vmul.f32 %v2011_v4, %v324_v48 }
  0x79   : > { %v797_v20 = vsel %vm795_vm3, %v783_v61, %v796_v28  ;;  %v1416_v8 = vsel %vm1414_vm4, %v783_v61, %v796_v28  ;;  %v585_v56 = vadd.s32 %v583_v24, %v581_v27  ;;  %v2347_v59 = vadd.s32 %v564_v50, %v555_v19 }
  0x7a   : > { %v801_v41 = vsel %vm794_vm5, %v797_v20, %v800_v11  ;;  %v1420_v44 = vsel %vm1413_vm6, %v1416_v8, %v1419_v17  ;;  %v932_v52 = vmul.f32 -0.001358992, %v931_v46  ;;  %v939_v37 = vmul.f32 -0.00019511016, %v931_v46 }
  0x7b   : > { %v802_v14 = vsel %vm792_vm7, nan, %v801_v41  ;;  %v1421_v42 = vsel %vm792_vm7, nan, %v1420_v44  ;;  %v2349_v22 = vadd.s32 %v580_v33, %v576_v12  ;;  %v1566_v63 = vadd.s32 3, %v930_v58 }
  0x7c   : > { %v1579_v3 = vsel %vm339_vm9, %v802_v14, %v1421_v42  ;;  %v933_v57 = vadd.f32 0.041655596, %v932_v52  ;;  %v940_v43 = vadd.f32 0.008332121, %v939_v37  ;;  %v586_v45 = vadd.s32 %v585_v56, %v575_v31 }
  0x7d   : > { %1597 = vperm.xlu1 %1880, %v1579_v3   ;;  %v344_v7 = vand.u32 2139095040, %v2345_v5  ;;  %v947_v23 = vand.u32 3, %v930_v58  ;;  %v588_v62 = vmul.u32 %v2220_v51, %v534_v53  ;;  %vm590_vm13 = vc.u32 %v2347_v59, %v2349_v22  ;;  %v1609_v58 = vld [vmem:[%s306_s29] sm:$0xf]  ;;  %s321_s29 = scalar_lea.vmem %s2502_s6, %s1828_s26 }
  0x7e   : > { %v934_v61 = vmul.f32 %v933_v57, %v931_v46  ;;  %v941_v30 = vmul.f32 %v940_v43, %v931_v46  ;;  %v587_v1 = vadd.s32 %v586_v45, %v577_v60  ;;  %v1567_v2 = vand.u32 3, %v1566_v63 }
  0x7f   : > { %v345_v29 = vshrl.u32 %v344_v7, 23  ;;  %vm948_vm14 = vcmp.lt.s32.totalorder %v947_v23, 2  ;;  %vm1615_vm15 = vcmask 130048   ;;  %vm949_vm0 = vcmp.eq.s32.totalorder %v947_v23, 0 }
  0x80   : > { %v935_v4 = vadd.f32 -0.4999988, %v934_v61  ;;  %v942_v13 = vadd.f32 -0.16666654, %v941_v30  ;;  %v591_v54 = vadd.s32 1, %v587_v1  ;;  %vm952_vm1 = vcmp.eq.s32.totalorder %v947_v23, 2 }
  0x81   : > { %v1797_v9 = vadd.s32 4294967169, %v345_v29  ;;  %vm1568_vm2 = vcmp.lt.s32.totalorder %v1567_v2, 2  ;;  %vm1572_vm3 = vcmp.eq.s32.totalorder %v1567_v2, 2  ;;  %vm1569_vm4 = vcmp.eq.s32.totalorder %v1567_v2, 0 }
  0x82   : > { %v936_v10 = vmul.f32 %v935_v4, %v931_v46  ;;  %v943_v16 = vmul.f32 %v942_v13, %v931_v46  ;;  %v592_v51 = vsel %vm590_vm13, %v591_v54, %v587_v1  ;;  %v341_v33 = vand.u32 2147483647, %v2345_v5 }
  0x83   : > { %v593_v19 = vadd.s32 %v592_v51, %v588_v62  ;;  %v351_v25 = vadd.s32 1, %v1797_v9  ;;  %vm946_vm6 = vweird.f32 %v2017_v6  ;;  %vm340_vm7 = vcmp.gt.f32.partialorder %v336_v47, 0.5 }
  0x84   : > { %v937_v21 = vadd.f32 1.0, %v936_v10  ;;  %v944_v18 = vadd.f32 1.0, %v943_v16  ;;  %v348_v6 = vand.u32 8388607, %v341_v33  ;;  %v589_v16 = vadd.s32 %v2349_v22, %v2347_v59 }
  0x85   : > { %v594_v12 = vadd.s32 536870912, %v593_v19  ;;  %vm352_vm5 = vcmp.gt.s32.totalorder %v351_v25, 0 }
  0x86   : > { %v945_v28 = vmul.f32 %v944_v18, %v929_v35  ;;  %v953_v11 = vxor.u32 2147483648, %v937_v21  ;;  %v353_v41 = vsel %vm352_vm5, %v351_v25, 0  ;;  %v349_v61 = vor.u32 8388608, %v348_v6 }
  0x87   : > { %v2370_v39 = vshrl.u32 %v594_v12, 30  ;;  %v355_v42 = vand.u32 31, %v353_v41  ;;  %v2380_v60 = vshrl.u32 %v353_v41, 5 }
  0x88   : > { %v1613_v26 = vpop.permute.xlu0 %1612  ;;  %v950_v20 = vxor.u32 2147483648, %v945_v28  ;;  %v954_v8 = vsel %vm952_vm1, %v953_v11, %v945_v28  ;;  %v1574_v35 = vsel %vm1572_vm3, %v953_v11, %v945_v28  ;;  %v2394_v10 = vshll.u32 %v349_v61, 8 }
  0x89   : > { %v2361_v17 = vsel %vm1615_vm15, %v1609_v58, %v1613_v26  ;;  %v596_v50 = vshll.u32 %v2370_v39, 30  ;;  %v356_v24 = vsub.s32 32, %v355_v42  ;;  %v358_v56 = vshll.u32 %v1929_v32, %v355_v42 }
  0x8a   : > { %1622 = vrot.lane.b32.xlu0 %v2361_v17, %s1935_s8  ;;  %v1618_v31 = vrot.slane %v2361_v17, 4  ;;  %v951_v44 = vsel %vm949_vm0, %v937_v21, %v950_v20  ;;  %v1571_v46 = vsel %vm1569_vm4, %v937_v21, %v950_v20  ;;  %v361_v43 = vshll.u32 %v1930_v34, %v355_v42 }
  0x8b   : > { %v955_v48 = vsel %vm948_vm14, %v951_v44, %v954_v8  ;;  %v1575_v14 = vsel %vm1568_vm2, %v1571_v46, %v1574_v35  ;;  %v597_v52 = vsub.s32 %v593_v19, %v596_v50  ;;  %v359_v57 = vshrl.u32 %v1930_v34, %v356_v24 }
  0x8c   : > { %1619 = vrot.lane.b32.xlu2 %v1618_v31, %s1936_s9  ;;  %v956_v27 = vsel %vm946_vm6, nan, %v955_v48  ;;  %v1576_v3 = vsel %vm946_vm6, nan, %v1575_v14  ;;  %v362_v63 = vshrl.u32 %v1931_v36, %v356_v24  ;;  %v367_v30 = vshll.u32 %v1932_v38, %v355_v42 }
  0x8d   : > { %v1580_v37 = vsel %vm340_vm7, %v956_v27, %v1576_v3  ;;  %vm598_vm8 = vcmp.lt.s32.totalorder %v597_v52, 0  ;;  %v599_v53 = vsub.s32 0, %v597_v52  ;;  %v368_v7 = vshrl.u32 %v1933_v40, %v356_v24 }
  0x8e   : > { %1602 = vperm.xlu1 %1880, %v1580_v37   ;;  %v364_v1 = vshll.u32 %v1931_v36, %v355_v42  ;;  %v365_v62 = vshrl.u32 %v1932_v38, %v356_v24  ;;  %v370_v13 = vshll.u32 %v1933_v40, %v355_v42  ;;  %v371_v29 = vshrl.u32 %v1934_v49, %v356_v24 }
  0x8f   : > { %v600_v45 = vsel %vm598_vm8, %v599_v53, %v597_v52  ;;  %v369_v4 = vor.u32 %v368_v7, %v367_v30  ;;  %v360_v34 = vor.u32 %v359_v57, %v358_v56  ;;  %v363_v54 = vor.u32 %v362_v63, %v361_v43 }
  0x90   : > { %v601_v23 = vclz %v600_v45  ;;  %vm376_vm9 = vcmp.lt.s32.totalorder %v2380_v60, 4  ;;  %vm373_vm10 = vcmp.lt.s32.totalorder %v2380_v60, 1  ;;  %v366_v36 = vor.u32 %v365_v62, %v364_v1 }
  0x91   : > { %vm374_vm12 = vcmp.lt.s32.totalorder %v2380_v60, 2  ;;  %v372_v40 = vor.u32 %v371_v29, %v370_v13  ;;  %vm375_vm13 = vcmp.lt.s32.totalorder %v2380_v60, 3  ;;  %v382_v49 = vsel %vm376_vm9, %v369_v4, 920167782 }
  0x92   : > { %v1801_v2 = vadd.s32 4294967294, %v601_v23  ;;  %v381_v21 = vsel %vm373_vm10, %v360_v34, %v363_v54  ;;  %v390_v18 = vand.u32 65535, %v2394_v10  ;;  %v383_v19 = vsel %vm375_vm13, %v366_v36, %v382_v49 }
  0x93   : > { %v391_v25 = vshrl.u32 %v2394_v10, 16  ;;  %v619_v26 = vsub.s32 4, %v2370_v39  ;;  %v384_v28 = vsel %vm374_vm12, %v381_v21, %v383_v19  ;;  %v385_v11 = vsel %vm373_vm10, %v363_v54, %v366_v36 }
  0x94   : > { %vm1802_vm11 = vcmp.lt.s32.totalorder %v1801_v2, 0  ;;  %v386_v12 = vsel %vm376_vm9, %v372_v40, 1326507024  ;;  %v414_v8 = vand.u32 65535, %v384_v28  ;;  %v357_v35 = vshrl.u32 %v1929_v32, %v356_v24 }
  0x95   : > { %v604_v38 = vsel %vm1802_vm11, 0, %v1801_v2  ;;  %v387_v20 = vsel %vm375_vm13, %v369_v4, %v386_v12  ;;  %v415_v44 = vshrl.u32 %v384_v28, 16  ;;  %vm2422_vm14 = vcmp.le.f32.partialorder %v495_v55, 0.7853982 }
  0x96   : > { %v605_v9 = vsub.s32 32, %v604_v38  ;;  %v606_v58 = vshll.u32 %v597_v52, %v604_v38  ;;  %v609_v51 = vsub.s32 4294967266, %v604_v38  ;;  %v388_v41 = vsel %vm374_vm12, %v385_v11, %v387_v20 }
  0x97   : > { %vm497_vm0 = vcmp.lt.s32.totalorder %v2029_v15, 0  ;;  %v378_v32 = vsel %vm376_vm9, %v366_v36, 2102212464  ;;  %v392_v42 = vand.u32 65535, %v388_v41  ;;  %v393_v27 = vshrl.u32 %v388_v41, 16 }
  0x98   : > { %v607_v59 = vshrl.u32 %v589_v16, %v605_v9  ;;  %v610_v22 = vadd.s32 127, %v609_v51  ;;  %v620_v14 = vsel %vm497_vm0, %v619_v26, %v2370_v39  ;;  %v416_v52 = vmul.u32 %v414_v8, %v390_v18 }
  0x99   : > { %v417_v6 = vmul.u32 %v415_v44, %v390_v18  ;;  %v418_v55 = vmul.u32 %v414_v8, %v391_v25  ;;  %v377_v37 = vsel %vm373_vm10, %v357_v35, %v360_v34  ;;  %v394_v24 = vmul.u32 %v392_v42, %v390_v18 }
  0x9a   : > { %v608_v47 = vor.u32 %v607_v59, %v606_v58  ;;  %v611_v31 = vshll.u32 %v610_v22, 23  ;;  %v395_v53 = vmul.u32 %v393_v27, %v390_v18  ;;  %v396_v56 = vmul.u32 %v392_v42, %v391_v25 }
  0x9b   : > { %v419_v43 = vmul.u32 %v415_v44, %v391_v25  ;;  %v420_v63 = vshll.u32 %v417_v6, 16  ;;  %v422_v45 = vshll.u32 %v418_v55, 16  ;;  %v379_v39 = vsel %vm375_vm13, %v363_v54, %v378_v32 }
  0x9c   : > { %v612_v50 = vor.u32 4788187, %v611_v31  ;;  %v615_v48 = vcvt.s32.f32 %v608_v47  ;;  %v397_v61 = vmul.u32 %v393_v27, %v391_v25  ;;  %v398_v30 = vshll.u32 %v395_v53, 16 }
  0x9d   : > { %v400_v7 = vshll.u32 %v396_v56, 16  ;;  %v421_v1 = vshrl.u32 %v417_v6, 16  ;;  %vm424_vm1 = vc.u32 %v416_v52, %v420_v63  ;;  %v426_v62 = vadd.s32 %v420_v63, %v416_v52 }
  0x9e   : > { %v613_v3 = vand.u32 2147483647, %v612_v50  ;;  %v399_v4 = vshrl.u32 %v395_v53, 16  ;;  %vm402_vm2 = vc.u32 %v394_v24, %v398_v30  ;;  %v404_v13 = vadd.s32 %v398_v30, %v394_v24 }
  0x9f   : > { %v425_v29 = vsel %vm424_vm1, 1, %v1927_v0  ;;  %v403_v34 = vsel %vm402_vm2, 1, %v1927_v0  ;;  %vm428_vm3 = vc.u32 %v426_v62, %v422_v45  ;;  %v423_v9 = vshrl.u32 %v418_v55, 16 }
  0xa0   : > { %v616_v57 = vmul.f32 %v615_v48, %v613_v3  ;;  %v427_v16 = vadd.s32 %v425_v29, %v419_v43  ;;  %v405_v36 = vadd.s32 %v403_v34, %v397_v61  ;;  %vm406_vm4 = vc.u32 %v404_v13, %v400_v7 }
  0xa1   : > { %v429_v38 = vsel %vm428_vm3, 1, %v1927_v0  ;;  %v407_v49 = vsel %vm406_vm4, 1, %v1927_v0  ;;  %v622_v51 = vsel %vm2422_vm14, 0, %v620_v14  ;;  %v401_v21 = vshrl.u32 %v396_v56, 16 }
  0xa2   : > { %v617_v23 = vxor.u32 2147483648, %v616_v57  ;;  %v431_v58 = vadd.s32 %v429_v38, %v427_v16  ;;  %v409_v18 = vadd.s32 %v407_v49, %v405_v36  ;;  %v380_v19 = vsel %vm374_vm12, %v377_v37, %v379_v39  ;;  %v334_v37 = vld [vmem:[%s2501_s5 + $0x8] sm:$0xff] }
  0xa3   : > { %v430_v28 = vadd.s32 %v426_v62, %v422_v45  ;;  %v1256_v31 = vadd.s32 3, %v622_v51  ;;  %v434_v20 = vmul.u32 %v2394_v10, %v380_v19  ;;  %v639_v48 = vand.u32 3, %v622_v51 }
  0xa4   : > { %v618_v2 = vsel %vm497_vm0, %v617_v23, %v616_v57  ;;  %v432_v25 = vadd.s32 %v431_v58, %v421_v1  ;;  %v410_v26 = vadd.s32 %v409_v18, %v399_v4  ;;  %vm638_vm12 = vweird.f32 %v2029_v15 }
  0xa5   : > { %v621_v54 = vsel %vm2422_vm14, %v2029_v15, %v618_v2  ;;  %v1257_v60 = vand.u32 3, %v1256_v31  ;;  %vm644_vm6 = vcmp.eq.s32.totalorder %v639_v48, 2  ;;  %vm640_vm8 = vcmp.lt.s32.totalorder %v639_v48, 2 }
  0xa6   : > { %v623_v40 = vmul.f32 %v621_v54, %v621_v54  ;;  %v433_v47 = vadd.s32 %v432_v25, %v423_v9  ;;  %v411_v0 = vadd.s32 %v410_v26, %v401_v21  ;;  %vm641_vm9 = vcmp.eq.s32.totalorder %v639_v48, 0 }
  0xa7   : > { %vm1262_vm7 = vcmp.eq.s32.totalorder %v1257_v60, 2  ;;  %vm1259_vm10 = vcmp.eq.s32.totalorder %v1257_v60, 0  ;;  %vm1258_vm11 = vcmp.lt.s32.totalorder %v1257_v60, 2  ;;  %vm338_vm13 = vcmp.gt.f32.partialorder %v334_v37, 0.5 }
  0xa8   : > { %v624_v59 = vmul.f32 -0.001358992, %v623_v40  ;;  %v631_v22 = vmul.f32 -0.00019511016, %v623_v40  ;;  %v437_v41 = vadd.s32 1, %v433_v47  ;;  %vm436_vm5 = vc.u32 %v411_v0, %v430_v28 }
  0xa9   : > { %v435_v29 = vadd.s32 %v430_v28, %v411_v0  ;;  %vm343_vm1 = vcmp.lt.s32.totalorder %v2345_v5, 0  ;;  %vm342_vm2 = vcmp.le.f32.partialorder %v341_v33, 0.7853982 }
  0xaa   : > { %v625_v11 = vadd.f32 0.041655596, %v624_v59  ;;  %v632_v12 = vadd.f32 0.008332121, %v631_v22  ;;  %v438_v50 = vsel %vm436_vm5, %v437_v41, %v433_v47 }
  0xab   : > { %v439_v14 = vadd.s32 %v438_v50, %v434_v20 }
  0xac   : > { %v626_v8 = vmul.f32 %v625_v11, %v623_v40  ;;  %v633_v35 = vmul.f32 %v632_v12, %v623_v40 }
  0xad   : > { %v440_v27 = vadd.s32 536870912, %v439_v14 }
  0xae   : > { %v627_v44 = vadd.f32 -0.4999988, %v626_v8  ;;  %v634_v46 = vadd.f32 -0.16666654, %v633_v35 }
  0xaf   : > { %v441_v6 = vshrl.u32 %v440_v27, 30 }
  0xb0   : > { %v628_v32 = vmul.f32 %v627_v44, %v623_v40  ;;  %v635_v42 = vmul.f32 %v634_v46, %v623_v40 }
  0xb1   : > { %v442_v24 = vshll.u32 %v441_v6, 30  ;;  %v465_v21 = vsub.s32 4, %v441_v6 }
  0xb2   : > { %v629_v3 = vadd.f32 1.0, %v628_v32  ;;  %v636_v52 = vadd.f32 1.0, %v635_v42  ;;  %v333_v32 = vld [vmem:[%s2501_s5] sm:$0xff] }
  0xb3   : > { %v443_v43 = vsub.s32 %v439_v14, %v442_v24  ;;  %v466_v22 = vsel %vm343_vm1, %v465_v21, %v441_v6 }
  0xb4   : > { %v637_v55 = vmul.f32 %v636_v52, %v621_v54  ;;  %v645_v10 = vxor.u32 2147483648, %v629_v3  ;;  %v468_v26 = vsel %vm342_vm2, 0, %v466_v22 }
  0xb5   : > { %vm444_vm14 = vcmp.lt.s32.totalorder %v443_v43, 0  ;;  %v445_v30 = vsub.s32 0, %v443_v43  ;;  %v1101_v31 = vadd.s32 3, %v468_v26  ;;  %v485_v41 = vand.u32 3, %v468_v26 }
  0xb6   : > { %v642_v53 = vxor.u32 2147483648, %v637_v55  ;;  %v646_v56 = vsel %vm644_vm6, %v645_v10, %v637_v55  ;;  %v1264_v57 = vsel %vm1262_vm7, %v645_v10, %v637_v55 }
  0xb7   : > { %v446_v62 = vsel %vm444_vm14, %v445_v30, %v443_v43  ;;  %v1102_v44 = vand.u32 3, %v1101_v31  ;;  %vm490_vm3 = vcmp.eq.s32.totalorder %v485_v41, 2  ;;  %vm486_vm5 = vcmp.lt.s32.totalorder %v485_v41, 2 }
  0xb8   : > { %v643_v63 = vsel %vm641_vm9, %v629_v3, %v642_v53  ;;  %v1261_v45 = vsel %vm1259_vm10, %v629_v3, %v642_v53  ;;  %v447_v4 = vclz %v446_v62  ;;  %vm487_vm6 = vcmp.eq.s32.totalorder %v485_v41, 0  ;;  %v1581_v62 = vld [vmem:[%s2499_s3] sm:$0xff] }
  0xb9   : > { %v647_v39 = vsel %vm640_vm8, %v643_v63, %v646_v56  ;;  %v1265_v61 = vsel %vm1258_vm11, %v1261_v45, %v1264_v57  ;;  %vm1107_vm4 = vcmp.eq.s32.totalorder %v1102_v44, 2  ;;  %vm1104_vm7 = vcmp.eq.s32.totalorder %v1102_v44, 0  ;;  %v1583_v63 = vld [vmem:[%s2499_s3 + $0x10] sm:$0xff] }
  0xba   : > { %v648_v7 = vsel %vm638_vm12, nan, %v647_v39  ;;  %v1266_v23 = vsel %vm638_vm12, nan, %v1265_v61  ;;  %v1798_v13 = vadd.s32 4294967294, %v447_v4  ;;  %vm1103_vm8 = vcmp.lt.s32.totalorder %v1102_v44, 2  ;;  %v1584_v61 = vld [vmem:[%s2499_s3 + $0x18] sm:$0xff] }
  0xbb   : > { %v1578_v1 = vsel %vm338_vm13, %v648_v7, %v1266_v23  ;;  %vm484_vm9 = vweird.f32 %v2345_v5  ;;  %vm337_vm10 = vcmp.gt.f32.partialorder %v333_v32, 0.5  ;;  %vm1641_vm11 = vcmask 1044480  }
  0xbc   : > { %1592 = vperm.xlu0 %1882, %v1578_v1   ;;  %vm1799_vm0 = vcmp.lt.s32.totalorder %v1798_v13, 0  ;;  %vm1625_vm12 = vcmask 1043456   ;;  %vm1628_vm13 = vcmask 105472  }
  0xbd   : > { %v450_v2 = vsel %vm1799_vm0, 0, %v1798_v13 }
  0xbe   : > { %v451_v34 = vsub.s32 32, %v450_v2  ;;  %v452_v15 = vshll.u32 %v443_v43, %v450_v2  ;;  %v455_v16 = vsub.s32 4294967266, %v450_v2 }
  0xc0   : > { %v453_v54 = vshrl.u32 %v435_v29, %v451_v34  ;;  %v456_v36 = vadd.s32 127, %v455_v16 }
  0xc2   : > { %v454_v38 = vor.u32 %v453_v54, %v452_v15  ;;  %v457_v40 = vshll.u32 %v456_v36, 23 }
  0xc4   : > { %v458_v49 = vor.u32 4788187, %v457_v40  ;;  %v461_v9 = vcvt.s32.f32 %v454_v38 }
  0xc6   : > { %v459_v58 = vand.u32 2147483647, %v458_v49 }
  0xc8   : > { %v462_v51 = vmul.f32 %v461_v9, %v459_v58 }
  0xca   : > { %v463_v18 = vxor.u32 2147483648, %v462_v51 }
  0xcc   : > { %v464_v59 = vsel %vm343_vm1, %v463_v18, %v462_v51 }
  0xcd   : > { %v467_v19 = vsel %vm342_vm2, %v2345_v5, %v464_v59 }
  0xce   : > { %v469_v25 = vmul.f32 %v467_v19, %v467_v19 }
  0xd0   : > { %v470_v28 = vmul.f32 -0.001358992, %v469_v25  ;;  %v477_v11 = vmul.f32 -0.00019511016, %v469_v25 }
  0xd2   : > { %v471_v12 = vadd.f32 0.041655596, %v470_v28  ;;  %v478_v47 = vadd.f32 0.008332121, %v477_v11 }
  0xd4   : > { %v472_v0 = vmul.f32 %v471_v12, %v469_v25  ;;  %v479_v20 = vmul.f32 %v478_v47, %v469_v25 }
  0xd6   : > { %v473_v8 = vadd.f32 -0.4999988, %v472_v0  ;;  %v480_v35 = vadd.f32 -0.16666654, %v479_v20 }
  0xd8   : > { %v474_v46 = vmul.f32 %v473_v8, %v469_v25  ;;  %v481_v33 = vmul.f32 %v480_v35, %v469_v25 }
  0xda   : > { %v475_v50 = vadd.f32 1.0, %v474_v46  ;;  %v482_v48 = vadd.f32 1.0, %v481_v33 }
  0xdc   : > { %v483_v60 = vmul.f32 %v482_v48, %v467_v19  ;;  %v491_v14 = vxor.u32 2147483648, %v475_v50 }
  0xde   : > { %v488_v42 = vxor.u32 2147483648, %v483_v60  ;;  %v492_v27 = vsel %vm490_vm3, %v491_v14, %v483_v60  ;;  %v1109_v3 = vsel %vm1107_vm4, %v491_v14, %v483_v60 }
  0xe0   : > { %v489_v52 = vsel %vm487_vm6, %v475_v50, %v488_v42  ;;  %v1106_v6 = vsel %vm1104_vm7, %v475_v50, %v488_v42 }
  0xe1   : > { %v493_v55 = vsel %vm486_vm5, %v489_v52, %v492_v27  ;;  %v1110_v10 = vsel %vm1103_vm8, %v1106_v6, %v1109_v3 }
  0xe2   : > { %v494_v37 = vsel %vm484_vm9, nan, %v493_v55  ;;  %v1111_v24 = vsel %vm484_vm9, nan, %v1110_v10 }
  0xe3   : > { %v1577_v53 = vsel %vm337_vm10, %v494_v37, %v1111_v24 }
  0xe4   : > { %1587 = vperm.xlu2 %1881, %v1577_v53  }
  0xe6   : > { %v1620_v57 = vpop.permute.xlu2 %1619 }
  0xe7   : > { %v1626_v5 = vsel %vm1625_vm12, %v2361_v17, %v1620_v57  ;;  %v1582_v17 = vld [vmem:[%s2499_s3 + $0x8] sm:$0xff] }
  0xef   : > { %v1598_v56 = vpop.permute.xlu1 %1597 }
  0xf0   : > { %v1607_v39 = vmul.f32 %v1598_v56, %v1583_v63 }
  0xfc   : > { %v1623_v43 = vpop.permute.xlu0 %1622 }
  0xfd   : > { %v1627_v45 = vsel %vm1625_vm12, %v1623_v43, 1.0 }
  0xfe   : > { %1821 = vmatpush.msk.msra.mxu0 %vm1641_vm11, %v1627_v45  ;;  %1829 = vmatpush.msk.msra.mxu1 %vm1641_vm11, %v1627_v45 }
  0xff   : > { %1830 = vmatpush.msk.msra.mxu2 %vm1641_vm11, %v1627_v45  ;;  %1831 = vmatpush.msk.msra.mxu3 %vm1641_vm11, %v1627_v45 }
 0x100   : > { %1660 = vmatpush.msra.mxu0 %v1626_v5  ;;  %1832 = vmatpush.msra.mxu1 %v1626_v5  ;;  %v1603_v30 = vpop.permute.xlu1 %1602 }
 0x101   : > { %1833 = vmatpush.msra.mxu2 %v1626_v5  ;;  %1834 = vmatpush.msra.mxu3 %v1626_v5  ;;  %v1608_v7 = vmul.f32 %v1603_v30, %v1584_v61 }
 0x102   : > { %1824 = vmatmul.msk.f32.vlgmr.msra.gmra.mxu2 %vm1628_vm13, %v1607_v39 }
 0x103   : > { %1825 = vmatmul.msk.f32.vlgmr.msra.gmra.mxu3 %vm1628_vm13, %v1608_v7 }
 0x12e   : > { %v1593_v23 = vpop.permute.xlu0 %1592 }
 0x12f   : > { %v1606_v1 = vmul.f32 %v1593_v23, %v1582_v17 }
 0x131   : > { %1823 = vmatmul.msk.f32.vlgmr.msra.gmra.mxu1 %vm1628_vm13, %v1606_v1 }
 0x13e   : > { %v1588_v4 = vpop.permute.xlu2 %1587 }
 0x13f   : > { %v1605_v13 = vmul.f32 %v1588_v4, %v1581_v62 }
 0x141   : > { %1822 = vmatmul.msk.f32.vlgmr.msra.gmra.mxu0 %vm1628_vm13, %v1605_v13 }
 0x185   : > { %v1668_v29 = vpop.f32.mrf.mxu2 }
 0x186   : > { %v1671_v2 = vpop.f32.mrf.mxu3  ;;  %1676 = vst.msk [vmem:[%s321_s29 + $0x10] sm:$0xff] %vm1615_vm15, %v1668_v29 }
 0x187   : > { %1677 = vst.msk [vmem:[%s321_s29 + $0x18] sm:$0xff] %vm1615_vm15, %v1671_v2 }
 0x1ae   : > { %v1665_v34 = vpop.f32.mrf.mxu1 }
 0x1af   : > { %1675 = vst.msk [vmem:[%s321_s29 + $0x8] sm:$0xff] %vm1615_vm15, %v1665_v34 }
 0x1be   : > { %v1662_v15 = vpop.f32.mrf.mxu0 }
 0x1bf   : > { %1674 = vst.msk [vmem:[%s321_s29] sm:$0xff] %vm1615_vm15, %v1662_v15 }
 0x1c0 PF: > { %s17_s23 = sadd.s32 1, %s1924_s23   ;;  %s2509_s21 = smov %s1920_s22 }
 0x1c1   : > { %p14_p8 = scmp.ge.s32.totalorder %s17_s23, 4   ;;  %s2510_s22 = smov %s2512_s25 }
 0x1c3   :  { %16 = sbr.rel (!%p14_p8) target bundleno = 2 (0x2), region = 82 }
 0x1c8   :  { %1705 = vsyncpa [#allocation3], 1 }
 0x1c9   :  { %1707 = vsyncpa [#allocation3 + $0x1], 1 }

</bundles_post_ra>
